<compile_context>
chip_gen: v6e
topology: v6e:2x2x1
jax: 0.10.0
libtpu: 0.0.40
codegen_flags: <defaults>
</compile_context>

<pallas_src>
import functools
import math

import numpy as np
import jax
import jax.numpy as jnp
from jax import lax
from jax.experimental import pallas as pl
from jax.experimental.pallas import tpu as pltpu

# ----------------------------- model constants (from the torch module) ------------------
INIT_DIM = 32
ENC_DIM = 32
LAYERS = (2, 3, 4, 6, 2, 2, 2, 2)
PLANES = (64, 128, 384, 640, 384, 384, 256, 128)
NUM_HEADS = 8

# 48 MiB scoped VMEM: honored on v5e/v6e (128 MiB physical) and on v7x (64 MiB physical).
VMEM_LIMIT = 48 * 1024 * 1024
LIN_TILE = 512   # row tile for plain linears
LSA_TILE = 256   # row tile for the fused attention kernel (bounds the (K, TILE, C) vg block)


def _row_tile(n, max_tile):
    # Small N: one full-array block (always layout-legal, identical to the untiled case).
    # Large N: a multiple-of-8 tile so the (8,128) sublane rule holds, the pipeline
    # double-buffers, and the "parallel" grid can be split across TensorCores.
    return n if n <= max_tile else max_tile


# ----------------------------- Pallas kernels -------------------------------------------
def _linear_kernel(x_ref, w_ref, b_ref, o_ref):
    # o = x @ w + b   (bf16 MXU operands, f32 accumulate; bias broadcast over rows)
    o_ref[...] = (
        jnp.dot(x_ref[...], w_ref[...], preferred_element_type=jnp.float32) + b_ref[...]
    )


def _linear_res_kernel(x_ref, w_ref, b_ref, r_ref, o_ref):
    # o = residual + x @ w + b   (used to fuse the ipm third linear with the "+ stensor" add)
    o_ref[...] = (
        jnp.dot(x_ref[...], w_ref[...], preferred_element_type=jnp.float32)
        + b_ref[...]
        + r_ref[...]
    )


@jax.jit
def _linear_pallas(x, w, b2):
    N, Cin = x.shape
    Cout = w.shape[1]
    t = _row_tile(N, LIN_TILE)
    return pl.pallas_call(
        _linear_kernel,
        out_shape=jax.ShapeDtypeStruct((N, Cout), jnp.float32),
        grid=(pl.cdiv(N, t),),
        in_specs=[
            pl.BlockSpec((t, Cin), lambda i: (i, 0)),
            pl.BlockSpec((Cin, Cout), lambda i: (0, 0)),
            pl.BlockSpec((1, Cout), lambda i: (0, 0)),
        ],
        out_specs=pl.BlockSpec((t, Cout), lambda i: (i, 0)),
        compiler_params=pltpu.CompilerParams(
            dimension_semantics=("parallel",), vmem_limit_bytes=VMEM_LIMIT),
    )(x, w, b2)


@jax.jit
def _linear_res_pallas(x, w, b2, res):
    N, Cin = x.shape
    Cout = w.shape[1]
    t = _row_tile(N, LIN_TILE)
    return pl.pallas_call(
        _linear_res_kernel,
        out_shape=jax.ShapeDtypeStruct((N, Cout), jnp.float32),
        grid=(pl.cdiv(N, t),),
        in_specs=[
            pl.BlockSpec((t, Cin), lambda i: (i, 0)),
            pl.BlockSpec((Cin, Cout), lambda i: (0, 0)),
            pl.BlockSpec((1, Cout), lambda i: (0, 0)),
            pl.BlockSpec((t, Cout), lambda i: (i, 0)),
        ],
        out_specs=pl.BlockSpec((t, Cout), lambda i: (i, 0)),
        compiler_params=pltpu.CompilerParams(
            dimension_semantics=("parallel",), vmem_limit_bytes=VMEM_LIMIT),
    )(x, w, b2, res)


def linear(x, w, b=None, residual=None):
    # y = x @ w + b (+ residual); bf16 MXU operands, f32 accumulation/output.
    Cout = w.shape[1]
    if b is None:
        b = jnp.zeros((Cout,), jnp.float32)
    xb = x.astype(jnp.bfloat16)
    wb = w.astype(jnp.bfloat16)
    b2 = jnp.reshape(b, (1, Cout)).astype(jnp.float32)
    if residual is None:
        return _linear_pallas(xb, wb, b2)
    return _linear_res_pallas(xb, wb, b2, residual.astype(jnp.float32))


def _lsa_kernel(x_ref, wq_ref, bq_ref, pn_ref, vg_ref, wout_ref, bout_ref, o_ref, acc_ref,
                *, num_heads):
    # Fused LightweightSelfAttention core (per row tile):
    #   q            = x @ Wq + bq                                   (bf16 MXU)
    #   qn           = per-head L2-normalized q (F.normalize, dim=-1)
    #   attn(i,k,h)  = <qn[i, head h], pn[k, head h]>                (pn pre-normalized)
    #   acc(i, :)    = sum_k attn(i,k,head(c)) * vg[k, i, :]         (invalid k pre-masked)
    #   o            = acc @ W_out + b_out                           (bf16 MXU)
    # Per-head reductions/broadcasts use tiny 0/1 matrices E (H,C) / Et (C,H) instead of the
    # old (C,C) block-diagonal mask -> ~C/(2H) fewer MXU FLOPs in the K-offset loop.
    K, C = pn_ref.shape
    H = num_heads
    A = C // H
    eps = 1e-12

    # q projection fused in
    q = jnp.dot(x_ref[...], wq_ref[...], preferred_element_type=jnp.float32) + bq_ref[...]

    # head <-> channel 0/1 matrices built from iota (cheap, hoisted out of the loop)
    E = (lax.broadcasted_iota(jnp.int32, (H, C), 1) // A
         == lax.broadcasted_iota(jnp.int32, (H, C), 0)).astype(jnp.float32)      # (H, C)
    Et = (lax.broadcasted_iota(jnp.int32, (C, H), 0) // A
          == lax.broadcasted_iota(jnp.int32, (C, H), 1)).astype(jnp.float32)     # (C, H)
    E16 = E.astype(jnp.bfloat16)
    Et16 = Et.astype(jnp.bfloat16)

    # per-head normalization of q
    qsq = jnp.dot(q * q, Et, preferred_element_type=jnp.float32)                 # (T, H)
    qinv = 1.0 / jnp.maximum(jnp.sqrt(qsq), eps)
    qn = q * jnp.dot(qinv, E, preferred_element_type=jnp.float32)                # (T, C)

    # NOTE: the accumulator lives in VMEM scratch; for the large-C layers it cannot fit in
    # vregs anyway, so a register-carried loop value would spill to the same place.
    acc_ref[...] = jnp.zeros_like(acc_ref)

    def body(k, carry):
        pk = pn_ref[pl.ds(k, 1), :]                                              # (1, C)
        a_h = jnp.dot((qn * pk).astype(jnp.bfloat16), Et16,
                      preferred_element_type=jnp.float32)                        # (T, H)
        a_nc = jnp.dot(a_h.astype(jnp.bfloat16), E16,
                       preferred_element_type=jnp.float32)                       # (T, C)
        acc_ref[...] = acc_ref[...] + a_nc * vg_ref[k].astype(jnp.float32)
        return carry

    lax.fori_loop(0, K, body, 0)

    # to_out projection fused in
    o_ref[...] = (
        jnp.dot(acc_ref[...].astype(jnp.bfloat16), wout_ref[...],
                preferred_element_type=jnp.float32)
        + bout_ref[...]
    )


@functools.partial(jax.jit, static_argnums=(7,))
def _lsa_pallas(x, wq, bq2, pn, vg, wout, bout2, num_heads):
    N, Cin = x.shape
    K, C = pn.shape
    Co = wout.shape[1]
    t = _row_tile(N, LSA_TILE)
    kern = functools.partial(_lsa_kernel, num_heads=num_heads)
    return pl.pallas_call(
        kern,
        out_shape=jax.ShapeDtypeStruct((N, Co), jnp.float32),
        grid=(pl.cdiv(N, t),),
        in_specs=[
            pl.BlockSpec((t, Cin), lambda i: (i, 0)),      # x tile (bf16)
            pl.BlockSpec((Cin, C), lambda i: (0, 0)),      # Wq (bf16)
            pl.BlockSpec((1, C), lambda i: (0, 0)),        # bq
            pl.BlockSpec((K, C), lambda i: (0, 0)),        # normalized inter_pos_enc
            pl.BlockSpec((K, t, C), lambda i: (0, i, 0)),  # gathered neighbour values (bf16)
            pl.BlockSpec((C, Co), lambda i: (0, 0)),       # W_out (bf16)
            pl.BlockSpec((1, Co), lambda i: (0, 0)),       # b_out
        ],
        out_specs=pl.BlockSpec((t, Co), lambda i: (i, 0)),
        scratch_shapes=[pltpu.VMEM((t, C), jnp.float32)],
        compiler_params=pltpu.CompilerParams(
            dimension_semantics=("parallel",), vmem_limit_bytes=VMEM_LIMIT),
    )(x, wq, bq2, pn, vg, wout, bout2)


# ----------------------------- small JAX glue --------------------------------------------
def relu(x):
    return jnp.maximum(x, 0.0)


def batchnorm(x, gamma, beta, eps=1e-5):
    # training-mode BatchNorm1d (biased variance), affine params at their init values
    mean = jnp.mean(x, axis=0, keepdims=True)
    var = jnp.mean(jnp.square(x - mean), axis=0, keepdims=True)
    return (x - mean) / jnp.sqrt(var + eps) * gamma + beta


def pool_level(feats, points, counts, parent_idx, n_parent):
    # MinkowskiMaxPooling(kernel=2, stride=2) + stride_centroids
    down_feats = (
        jnp.full((n_parent, feats.shape[1]), -jnp.inf, jnp.float32).at[parent_idx].max(feats)
    )
    wsum = jnp.zeros((n_parent, 3), jnp.float32).at[parent_idx].add(points * counts[:, None])
    csum = jnp.zeros((n_parent,), jnp.float32).at[parent_idx].add(counts)
    down_points = wsum / csum[:, None]
    return down_feats, down_points, csum


# ----------------------------- parameter init --------------------------------------------
class ParamRNG:
    def __init__(self, seed):
        self._key = jax.random.PRNGKey(seed)

    def next(self):
        self._key, sub = jax.random.split(self._key)
        return sub


def init_w(rng, cin, cout):
    lim = 1.0 / math.sqrt(cin)
    return jax.random.uniform(rng.next(), (cin, cout), jnp.float32, -lim, lim)


def init_lin(rng, cin, cout):
    lim = 1.0 / math.sqrt(cin)
    return {
        "w": init_w(rng, cin, cout),
        "b": jax.random.uniform(rng.next(), (cout,), jnp.float32, -lim, lim),
    }


def init_bn(c):
    return (jnp.ones((c,), jnp.float32), jnp.zeros((c,), jnp.float32))


def init_lsa(rng, cin, cout, ksize=3, heads=NUM_HEADS):
    assert cout % heads == 0
    A = cout // heads
    K = ksize ** 3
    return {
        "heads": heads,
        "ipm_w1": init_w(rng, 3, 3),
        "ipm_bn1": init_bn(3),
        "ipm_w2": init_w(rng, 3, cin),
        "ipm_bn2": init_bn(cin),
        "ipm_w3": init_lin(rng, cin, cin),
        "q": init_lin(rng, cin, cout),
        "v": init_lin(rng, cin, cout),
        "out": init_lin(rng, cout, cout),
        "pos": jax.random.normal(rng.next(), (K, heads, A), jnp.float32),  # N(0,1)
    }


def init_block(rng, ch):
    return {
        "l1": init_lsa(rng, ch, ch),
        "bn1": init_bn(ch),
        "l2": init_lsa(rng, ch, ch),
        "bn2": init_bn(ch),
    }


def init_params(rng, in_ch, out_ch, T):
    P = {}
    P["enc_w1"] = init_w(rng, 3, ENC_DIM)
    P["enc_bn1"] = init_bn(ENC_DIM)
    P["enc_w2"] = init_w(rng, ENC_DIM, ENC_DIM)
    P["enc_bn2"] = init_bn(ENC_DIM)
    P["te1"] = init_lin(rng, T, T)
    P["te2"] = init_lin(rng, T, T)

    P["attn0p1"] = init_lsa(rng, in_ch + ENC_DIM, INIT_DIM, ksize=5)
    P["bn0"] = init_bn(INIT_DIM)
    P["attn1p1"] = init_lsa(rng, INIT_DIM, PLANES[0])
    P["bn1"] = init_bn(PLANES[0])
    P["block1"] = [init_block(rng, PLANES[0] + T) for _ in range(LAYERS[0])]
    P["attn2p2"] = init_lsa(rng, PLANES[0] + T, PLANES[1])
    P["bn2"] = init_bn(PLANES[1])
    P["block2"] = [init_block(rng, PLANES[1] + T) for _ in range(LAYERS[1])]
    P["attn3p4"] = init_lsa(rng, PLANES[1] + T, PLANES[2])
    P["bn3"] = init_bn(PLANES[2])
    P["block3"] = [init_block(rng, PLANES[2] + T) for _ in range(LAYERS[2])]
    P["attn4p8"] = init_lsa(rng, PLANES[2] + T, PLANES[3])
    P["bn4"] = init_bn(PLANES[3])
    P["block4"] = [init_block(rng, PLANES[3] + T) for _ in range(LAYERS[3])]
    P["attn5p8"] = init_lsa(rng, 2 * (PLANES[3] + T), PLANES[4])
    P["bn5"] = init_bn(PLANES[4])
    P["block5"] = [init_block(rng, PLANES[4]) for _ in range(LAYERS[4])]
    P["attn6p4"] = init_lsa(rng, PLANES[4] + PLANES[2] + T, PLANES[5])
    P["bn6"] = init_bn(PLANES[5])
    P["block6"] = [init_block(rng, PLANES[5]) for _ in range(LAYERS[5])]
    P["attn7p2"] = init_lsa(rng, PLANES[5] + PLANES[1] + T, PLANES[6])
    P["bn7"] = init_bn(PLANES[6])
    P["block7"] = [init_block(rng, PLANES[6]) for _ in range(LAYERS[6])]
    P["attn8p1"] = init_lsa(rng, PLANES[6] + PLANES[0] + T, PLANES[7])
    P["bn8"] = init_bn(PLANES[7])
    P["block8"] = [init_block(rng, PLANES[7]) for _ in range(LAYERS[7])]

    P["final_w1"] = init_w(rng, PLANES[7] + ENC_DIM, PLANES[7])
    P["final_bn"] = init_bn(PLANES[7])
    P["final_l2"] = init_lin(rng, PLANES[7], out_ch)
    return P


# ----------------------------- layer / block forward --------------------------------------
def lsa_forward(p, feats, norm_points, nbr_idx, nbr_mask):
    # intra-voxel positional MLP: the two skewed (·,3) matmuls + BNs run as XLA/VPU glue
    # (contraction dim 3 would waste the MXU); the Cin->Cin linear is fused with the
    # "+ stensor" residual add in one Pallas call.
    h = jnp.dot(norm_points, p["ipm_w1"])
    h = relu(batchnorm(h, *p["ipm_bn1"]))
    h = jnp.dot(h, p["ipm_w2"])
    h = relu(batchnorm(h, *p["ipm_bn2"]))
    x = linear(h, p["ipm_w3"]["w"], p["ipm_w3"]["b"], residual=feats)

    x16 = x.astype(jnp.bfloat16)
    v = linear(x16, p["v"]["w"], p["v"]["b"])

    K, H, A = p["pos"].shape
    C = H * A

    # sparse neighbour gather of v in plain JAX (see TODO) -> offset-major (K, N, C) bf16;
    # invalid neighbours are pre-masked to zero so they contribute nothing in-kernel.
    vg = jnp.take(v.astype(jnp.bfloat16), nbr_idx, axis=0)            # (N, K, C)
    vg = vg * nbr_mask[:, :, None].astype(jnp.bfloat16)
    vg = jnp.transpose(vg, (1, 0, 2))                                 # (K, N, C)

    # F.normalize(inter_pos_enc, dim=-1) is tiny -> plain JAX, passed pre-normalized
    pos = p["pos"]
    pnorm = jnp.sqrt(jnp.sum(pos * pos, axis=-1, keepdims=True))
    pn = (pos / jnp.maximum(pnorm, 1e-12)).reshape(K, C).astype(jnp.float32)

    return _lsa_pallas(
        x16,
        p["q"]["w"].astype(jnp.bfloat16),
        jnp.reshape(p["q"]["b"], (1, C)).astype(jnp.float32),
        pn,
        vg,
        p["out"]["w"].astype(jnp.bfloat16),
        jnp.reshape(p["out"]["b"], (1, -1)).astype(jnp.float32),
        H,
    )


def block_forward(bp, feats, norm_points, nbr_idx, nbr_mask):
    res = feats
    out = relu(batchnorm(lsa_forward(bp["l1"], feats, norm_points, nbr_idx, nbr_mask), *bp["bn1"]))
    out = batchnorm(lsa_forward(bp["l2"], out, norm_points, nbr_idx, nbr_mask), *bp["bn2"])
    return relu(out + res)


# ----------------------------- host-side coordinate bookkeeping ---------------------------
def build_geometry(points_vox, batch):
    g = {}
    vox = np.floor(points_vox).astype(np.int64)
    key = np.concatenate([batch[:, None], vox], axis=1)
    uniq, inv = np.unique(key, axis=0, return_inverse=True)
    g["tensor_map"] = jnp.asarray(inv.astype(np.int32))
    g["n1"] = int(uniq.shape[0])
    coords = {1: uniq[:, 1:]}
    batches = {1: uniq[:, 0]}

    def kmap(s, ks):
        c, b = coords[s], batches[s]
        lut = {tuple(int(v) for v in row): i
               for i, row in enumerate(np.concatenate([b[:, None], c], axis=1))}
        r = ks // 2
        offs = [(dx, dy, dz) for dx in range(-r, r + 1)
                for dy in range(-r, r + 1) for dz in range(-r, r + 1)]
        n, K = c.shape[0], len(offs)
        idx = np.zeros((n, K), np.int32)
        msk = np.zeros((n, K), np.float32)
        for i in range(n):
            bi = int(b[i]); x0, y0, z0 = (int(v) for v in c[i])
            for k, (dx, dy, dz) in enumerate(offs):
                j = lut.get((bi, x0 + dx * s, y0 + dy * s, z0 + dz * s))
                if j is not None:
                    idx[i, k] = j
                    msk[i, k] = 1.0
        return jnp.asarray(idx), jnp.asarray(msk)

    def pmap(s):
        c, b = coords[s], batches[s]
        pc = (c // (2 * s)) * (2 * s)
        key2 = np.concatenate([b[:, None], pc], axis=1)
        u2, inv2 = np.unique(key2, axis=0, return_inverse=True)
        coords[2 * s] = u2[:, 1:]
        batches[2 * s] = u2[:, 0]
        return jnp.asarray(inv2.astype(np.int32)), int(u2.shape[0])

    g["nbr1_5"] = kmap(1, 5)
    g["nbr1_3"] = kmap(1, 3)
    g["parent12"], g["n2"] = pmap(1)
    g["nbr2_3"] = kmap(2, 3)
    g["parent24"], g["n4"] = pmap(2)
    g["nbr4_3"] = kmap(4, 3)
    g["parent48"], g["n8"] = pmap(4)
    g["nbr8_3"] = kmap(8, 3)
    g["parent816"], g["n16"] = pmap(8)
    g["nbr16_3"] = kmap(16, 3)
    for s in (1, 2, 4, 8, 16):
        g[f"coords{s}"] = jnp.asarray(coords[s].astype(np.float32))
        g[f"batch{s}"] = jnp.asarray(batches[s].astype(np.int32))
    return g


# ----------------------------- full forward ------------------------------------------------
def forward(P, features, coordinates, timesteps, geom, voxel_size, T):
    B, Np, Cin = features.shape
    feats = features.reshape(B * Np, Cin).astype(jnp.float32)
    points = (coordinates.reshape(B * Np, 3) / voxel_size).astype(jnp.float32)

    # timestep embedding + MLP
    ts = timesteps.reshape(-1).astype(jnp.float32)
    half = T // 2
    freq = jnp.exp(jnp.arange(half, dtype=jnp.float32) * -(math.log(10000.0) / (half - 1)))
    emb = ts[:, None] * freq[None, :]
    temb = jnp.concatenate([jnp.sin(emb), jnp.cos(emb)], axis=1)
    temb = linear(temb, P["te1"]["w"], P["te1"]["b"])
    temb = jnp.where(temb > 0, temb, 0.1 * temb)  # LeakyReLU(0.1)
    temb = linear(temb, P["te2"]["w"], P["te2"]["b"])

    # voxelize_with_centroids
    tm, n1 = geom["tensor_map"], geom["n1"]
    cnt1 = jnp.zeros((n1,), jnp.float32).at[tm].add(1.0)
    points_p1 = jnp.zeros((n1, 3), jnp.float32).at[tm].add(points) / cnt1[:, None]
    norm_points = points - points_p1[tm]
    vox_feats = jnp.zeros((n1, Cin), jnp.float32).at[tm].add(feats) / cnt1[:, None]
    h = linear(norm_points, P["enc_w1"])
    h = jnp.tanh(batchnorm(h, *P["enc_bn1"]))
    h = linear(h, P["enc_w2"])
    pos_embs = jnp.tanh(batchnorm(h, *P["enc_bn2"]))
    down_pos = jnp.zeros((n1, ENC_DIM), jnp.float32).at[tm].add(pos_embs) / cnt1[:, None]
    out = jnp.concatenate([vox_feats, down_pos], axis=1)
    npts1 = (points_p1 - geom["coords1"]) / 1.0 - 0.5

    def te_cat(x, s):
        # equals time_embed.repeat_interleave(len(x)//bs, 0) since voxels are batch-sorted
        return jnp.concatenate([x, temb[geom[f"batch{s}"]]], axis=1)

    # encoder
    out = relu(batchnorm(lsa_forward(P["attn0p1"], out, npts1, *geom["nbr1_5"]), *P["bn0"]))
    out_p1 = relu(batchnorm(lsa_forward(P["attn1p1"], out, npts1, *geom["nbr1_3"]), *P["bn1"]))
    out_p1 = te_cat(out_p1, 1)

    out, points_p2, cnt2 = pool_level(out_p1, points_p1, cnt1, geom["parent12"], geom["n2"])
    npts2 = (points_p2 - geom["coords2"]) / 2.0 - 0.5
    for bp in P["block1"]:
        out = block_forward(bp, out, npts2, *geom["nbr2_3"])
    out_p2 = relu(batchnorm(lsa_forward(P["attn2p2"], out, npts2, *geom["nbr2_3"]), *P["bn2"]))
    out_p2 = te_cat(out_p2, 2)

    out, points_p4, cnt4 = pool_level(out_p2, points_p2, cnt2, geom["parent24"], geom["n4"])
    npts4 = (points_p4 - geom["coords4"]) / 4.0 - 0.5
    for bp in P["block2"]:
        out = block_forward(bp, out, npts4, *geom["nbr4_3"])
    out_p4 = relu(batchnorm(lsa_forward(P["attn3p4"], out, npts4, *geom["nbr4_3"]), *P["bn3"]))
    out_p4 = te_cat(out_p4, 4)

    out, points_p8, cnt8 = pool_level(out_p4, points_p4, cnt4, geom["parent48"], geom["n8"])
    npts8 = (points_p8 - geom["coords8"]) / 8.0 - 0.5
    for bp in P["block3"]:
        out = block_forward(bp, out, npts8, *geom["nbr8_3"])
    out_p8 = relu(batchnorm(lsa_forward(P["attn4p8"], out, npts8, *geom["nbr8_3"]), *P["bn4"]))
    out_p8 = te_cat(out_p8, 8)

    out, points_p16, _ = pool_level(out_p8, points_p8, cnt8, geom["parent816"], geom["n16"])
    npts16 = (points_p16 - geom["coords16"]) / 16.0 - 0.5
    for bp in P["block4"]:
        out = block_forward(bp, out, npts16, *geom["nbr16_3"])

    # decoder
    out = out[geom["parent816"]]                       # pooltr p16 -> p8
    out = jnp.concatenate([out, out_p8], axis=1)
    out = relu(batchnorm(lsa_forward(P["attn5p8"], out, npts8, *geom["nbr8_3"]), *P["bn5"]))
    for bp in P["block5"]:
        out = block_forward(bp, out, npts8, *geom["nbr8_3"])

    out = out[geom["parent48"]]                        # pooltr p8 -> p4
    out = jnp.concatenate([out, out_p4], axis=1)
    out = relu(batchnorm(lsa_forward(P["attn6p4"], out, npts4, *geom["nbr4_3"]), *P["bn6"]))
    for bp in P["block6"]:
        out = block_forward(bp, out, npts4, *geom["nbr4_3"])

    out = out[geom["parent24"]]                        # pooltr p4 -> p2
    out = jnp.concatenate([out, out_p2], axis=1)
    out = relu(batchnorm(lsa_forward(P["attn7p2"], out, npts2, *geom["nbr2_3"]), *P["bn7"]))
    for bp in P["block7"]:
        out = block_forward(bp, out, npts2, *geom["nbr2_3"])

    out = out[geom["parent12"]]                        # pooltr p2 -> p1
    out = jnp.concatenate([out, out_p1], axis=1)
    out = relu(batchnorm(lsa_forward(P["attn8p1"], out, npts1, *geom["nbr1_3"]), *P["bn8"]))
    for bp in P["block8"]:
        out = block_forward(bp, out, npts1, *geom["nbr1_3"])

    # devoxelize_with_centroids + final MLP
    sliced = out[tm]                                   # out.slice(x)
    h = jnp.concatenate([sliced, pos_embs], axis=1)
    h = linear(h, P["final_w1"])
    h = relu(batchnorm(h, *P["final_bn"]))
    h = linear(h, P["final_l2"]["w"], P["final_l2"]["b"])
    return h.reshape(features.shape)                   # out.view(*features.shape)


# ----------------------------- main ---------------------------------------------------------
if __name__ == "__main__":
    B, Np = 1, 128
    in_channels = 4
    out_channels = 4          # must equal in_channels for the final .view(*features.shape)
    time_embed_dim = 8
    voxel_size = 0.02

    key = jax.random.PRNGKey(0)
    kc, kf = jax.random.split(key)
    coordinates = jax.random.uniform(kc, (B, Np, 3), jnp.float32, 0.0, 0.64)
    features = jax.random.normal(kf, (B, Np, in_channels), jnp.float32)
    timesteps = jnp.array([10.0], jnp.float32)

    # host-side coordinate manager replacement
    pts_np = np.asarray(coordinates).reshape(B * Np, 3) / voxel_size
    batch_np = np.repeat(np.arange(B), Np)
    geom = build_geometry(pts_np, batch_np)

    rng = ParamRNG(0)
    params = init_params(rng, in_channels, out_channels, time_embed_dim)

    out = forward(params, features, coordinates, timesteps, geom, voxel_size, time_embed_dim)
    out = jax.block_until_ready(out)
    assert out.shape == features.shape
    assert bool(jnp.all(jnp.isfinite(out)))
    print("KERNEL_OK")
</pallas_src>

<mosaic_0001>
module attributes {stable_mosaic.version = 11 : i64} {
  func.func @_linear_kernel(%arg0: i32, %arg1: memref<1x8xbf16, #tpu.memory_space<vmem>>, %arg2: memref<8x8xbf16, #tpu.memory_space<vmem>>, %arg3: memref<1x8xf32, #tpu.memory_space<vmem>>, %arg4: memref<1x8xf32, #tpu.memory_space<vmem>>) attributes {dimension_semantics = [#tpu.dimension_semantics<parallel>], iteration_bounds = array<i64: 1>, scalar_prefetch = 0 : i64, scratch_operands = 0 : i64, tpu.core_type = #tpu.core_type<tc>, window_params = [{transform_indices = @transform_0, window_bounds = array<i64: 1, 8>}, {pipeline_mode = #tpu.pipeline_mode<synchronous>, transform_indices = @transform_1, window_bounds = array<i64: 8, 8>}, {pipeline_mode = #tpu.pipeline_mode<synchronous>, transform_indices = @transform_2, window_bounds = array<i64: 1, 8>}, {transform_indices = @transform_3, window_bounds = array<i64: 1, 8>}]} {
    %c0 = arith.constant 0 : index
    %c0_0 = arith.constant 0 : index
    %0 = vector.load %arg1[%c0, %c0_0] : memref<1x8xbf16, #tpu.memory_space<vmem>>, vector<1x8xbf16>
    %c0_1 = arith.constant 0 : index
    %c0_2 = arith.constant 0 : index
    %1 = vector.load %arg2[%c0_1, %c0_2] : memref<8x8xbf16, #tpu.memory_space<vmem>>, vector<8x8xbf16>
    %cst = arith.constant dense<0.000000e+00> : vector<1x8xf32>
    %2 = tpu.matmul %0, %1, %cst {dimension_numbers = #tpu.dot_dimension_numbers<[1], [0], [0], [1], [0, 0, 1, 1], [], []>} : vector<1x8xbf16>, vector<8x8xbf16>, vector<1x8xf32> -> vector<1x8xf32>
    %c0_3 = arith.constant 0 : index
    %c0_4 = arith.constant 0 : index
    %3 = vector.load %arg3[%c0_3, %c0_4] : memref<1x8xf32, #tpu.memory_space<vmem>>, vector<1x8xf32>
    %4 = arith.addf %2, %3 : vector<1x8xf32>
    %c0_5 = arith.constant 0 : index
    %c0_6 = arith.constant 0 : index
    %5 = vector.load %arg4[%c0_5, %c0_6] : memref<1x8xf32, #tpu.memory_space<vmem>>, vector<1x8xf32>
    tpu.vector_store %arg4[%c0_5, %c0_6], %4 {strides = array<i32>} : memref<1x8xf32, #tpu.memory_space<vmem>>, vector<1x8xf32>,
    return
  }
  func.func @transform_0(%arg0: i32) -> (i32, i32) {
    %c0_i32 = arith.constant 0 : i32
    %c0_i32_0 = arith.constant 0 : i32
    return %arg0, %c0_i32 : i32, i32
  }
  func.func @transform_1(%arg0: i32) -> (i32, i32) {
    %c0_i32 = arith.constant 0 : i32
    %c0_i32_0 = arith.constant 0 : i32
    %c0_i32_1 = arith.constant 0 : i32
    return %c0_i32, %c0_i32_0 : i32, i32
  }
  func.func @transform_2(%arg0: i32) -> (i32, i32) {
    %c0_i32 = arith.constant 0 : i32
    %c0_i32_0 = arith.constant 0 : i32
    %c0_i32_1 = arith.constant 0 : i32
    return %c0_i32, %c0_i32_0 : i32, i32
  }
  func.func @transform_3(%arg0: i32) -> (i32, i32) {
    %c0_i32 = arith.constant 0 : i32
    %c0_i32_0 = arith.constant 0 : i32
    return %arg0, %c0_i32 : i32, i32
  }
}

</mosaic_0001>

<bundles_post_ra>
// kernel: _linear_pallas.1
= control target key start
LH: loop header
LB: loop body
LE: loop exit
PB: predicated region body
PF: predicated region fallthrough
CT: control target
= control target key end

     0   :  { %8 = vsyncpa [#allocation3], 0  ;;  %s226_s0 = inlined_call_operand.hbm [shape: bf16[1,8], index: 0, kind: input, shape index: {}]   ;;  %s227_s1 = inlined_call_operand.hbm [shape: bf16[8,8], index: 1, kind: input, shape index: {}]   ;;  %s228_s2 = inlined_call_operand.vmem [shape: f32[1,8], index: 2, kind: input, shape index: {}]   ;;  %s229_s3 = inlined_call_operand.hbm [shape: f32[1,8], index: 3, kind: output, shape index: {}]  }
   0x1   :  { %9 = vsyncpa [#allocation6], 0 }
   0x2   :  { %10 = vsyncpa [#allocation4], 0  ;;  %s189_s12 = smov [#allocation2]   ;;  %s190_s14 = smov [#allocation5]  }
   0x3   :  { %s17_s13 = sshll.u32 %s189_s12, 4  ;;  %s27_s15 = sshll.u32 %s190_s14, 4  ;;  %s18_s13 = int_to_ptr.vmem [resolvable:$true] %s17_s13  ;;  %s28_s15 = int_to_ptr.vmem [resolvable:$true] %s27_s15 }
   0x4   :  { %s131_s16 = scalar_lea.vmem %s18_s13, 16  ;;  %s135_s17 = scalar_lea.vmem %s18_s13, 32 }
   0x5   :  { %p132_p0 = scmp.ne.s32.totalorder %s18_s13, %s131_s16  ;;  %p136_p1 = scmp.lt.s32.totalorder %s18_s13, %s18_s13 }
   0x6   :  { %p137_p2 = scmp.lt.s32.totalorder %s135_s17, %s131_s16 }
   0x8   :  { %p138_p3 = por %p137_p2, %p136_p1 }
   0xa   :  { %p139_p4 = pnand %p138_p3, %p132_p0 }
   0xc   :  { %142 = shalt.err (!%p139_p4)
}
   0xd   :  { %20 = dma.hbm_to_vmem [thread:$0]  %s226_s0, 16, %s18_s13, [#allocation3]  }
   0xe   :  { %s151_s20 = scalar_lea.vmem %s28_s15, 64  ;;  %p156_p6 = scmp.lt.s32.totalorder %s28_s15, %s28_s15 }
   0xf   :  { %p152_p5 = scmp.ne.s32.totalorder %s28_s15, %s151_s20  ;;  %p157_p7 = scmp.lt.s32.totalorder %s151_s20, %s151_s20 }
  0x11   :  { %p158_p8 = por %p157_p7, %p156_p6 }
  0x13   :  { %p159_p9 = pnand %p158_p8, %p152_p5 }
  0x15   :  { %162 = shalt.err (!%p159_p9)
}
  0x16   :  { %30 = dma.hbm_to_vmem [thread:$0]  %s227_s1, 64, %s28_s15, [#allocation6]  }
  0x17   :  { %183 = dma.done.wait [#allocation3], 16  }
  0x18   :  { %184 = vsyncadd [#allocation3], 4294967280 }
  0x19   :  { %185 = dma.done.wait [#allocation6], 64  }
  0x1a   :  { %186 = vsyncadd [#allocation6], 4294967232  ;;  %v191_v0 = vmov 0.0   ;;  %vm192_vm0 = vmmov 0   ;;  %vm47_vm1 = vcmask 1043456   ;;  %vm43_vm2 = vcmask 64512  }
  0x1b   :  { %112 = vmatprep.subr.bf16.mxu0 %v191_v0  ;;  %114 = vmatprep.mubr.msk.bf16.mxu0 %vm192_vm0, %v191_v0  ;;  %v41_v1 = vld [vmem:[#allocation5] sm:$0xf]  ;;  %v40_v3 = vld [vmem:[#allocation2] sm:$0x1]  ;;  %s193_s1 = smov [#allocation7]   ;;  %vm91_vm3 = vcmask 57344  }
  0x1c   :  { %v49_v2 = vsel %vm47_vm1, %v41_v1, 0  ;;  %v42_v4 = vld [vmem:[%s228_s2] sm:$0x1]  ;;  %s99_s24 = sshll.u32 %s193_s1, 4  ;;  %s100_s24 = int_to_ptr.vmem [resolvable:$true] %s99_s24 }
  0x1d   :  { %113 = vmatpush3.bf16.msra.mxu0 %v49_v2  ;;  %s163_s25 = scalar_lea.vmem %s100_s24, 16  ;;  %s167_s26 = scalar_lea.vmem %s100_s24, 32 }
  0x1e   :  { %p164_p10 = scmp.ne.s32.totalorder %s100_s24, %s163_s25  ;;  %p168_p11 = scmp.lt.s32.totalorder %s100_s24, %s100_s24 }
  0x1f   :  { %p169_p12 = scmp.lt.s32.totalorder %s167_s26, %s163_s25 }
  0x20   :  { %115 = vmatmul.mubr.msk.bf16.vlgmr.msra.gmra.mxu0 %vm43_vm2, %v40_v3 }
  0x21   :  { %p170_p13 = por %p169_p12, %p168_p11 }
  0x23   :  { %p171_p0 = pnand %p170_p13, %p164_p10 }
  0xe0   :  { %v85_v5 = vpop.f32.mrf.mxu0 }
  0xe1   :  { %v86_v6 = vadd.f32 %v85_v5, %v42_v4 }
  0xe2   :  { %v116_v7 = vpop.f32.mrf.mxu0 }
  0xe3   :  { %92 = vst.msk [vmem:[#allocation7] sm:$0x1] %vm91_vm3, %v86_v6 }
  0xe4   :  { %v88_v8 = vpop.f32.mrf.mxu0 }
  0xe5   :  { %174 = shalt.err (!%p171_p0)
}
  0xe6   :  { %102 = dma.vmem_to_hbm [thread:$0]  %s100_s24, 16, %s229_s3, [#allocation4]   ;;  %v117_v9 = vpop.f32.mrf.mxu0 }
  0xe7   :  { %187 = dma.done.wait [#allocation4], 16  }
  0xe8   :  { %188 = vsyncadd [#allocation4], 4294967280 }
  0xe9   :  { %106 = vsyncpa [#allocation3], 1 }
  0xea   :  { %107 = vsyncpa [#allocation6], 1 }
  0xeb   :  { %108 = vsyncpa [#allocation4], 1 }

</bundles_post_ra>
